<compile_context>
chip_gen: v7x
topology: tpu7x:2x2x1
jax: 0.10.0
libtpu: 0.0.40
codegen_flags: <defaults>
</compile_context>

<pallas_src>
import functools

import jax
import jax.numpy as jnp
from jax import lax
from jax.experimental import pallas as pl
from jax.experimental.pallas import tpu as pltpu


def _round_up(x, m):
    return ((x + m - 1) // m) * m


def _conv_gemm_kernel(lhs_ref, rhs_ref, out_ref, acc_ref):
    """One (TM, TN) output tile of patches @ weights, reduced over grid axis 2."""
    @pl.when(pl.program_id(2) == 0)
    def _init():
        acc_ref[...] = jnp.zeros_like(acc_ref)

    # Single MXU matmul per (tile, k-step); bf16 operands, f32 accumulation.
    acc_ref[...] += jnp.dot(
        lhs_ref[...], rhs_ref[...], preferred_element_type=jnp.float32
    )

    @pl.when(pl.program_id(2) == pl.num_programs(2) - 1)
    def _finalize():
        out_ref[...] = acc_ref[...].astype(out_ref.dtype)


@functools.partial(jax.jit, static_argnames=("stride", "padding"))
def conv2d_pallas(x_nchw, w_oihw, *, stride=1, padding=0):
    """Conv2D forward (no bias), matching torch.nn.Conv2d semantics.

    x_nchw: (N, Cin, H, W)
    w_oihw: (Cout, Cin, KH, KW)
    returns: (N, Cout, OH, OW)
    """
    N, Cin, H, W = x_nchw.shape
    Cout, Cin_w, KH, KW = w_oihw.shape
    assert Cin == Cin_w

    OH = (H + 2 * padding - KH) // stride + 1
    OW = (W + 2 * padding - KW) // stride + 1

    # ---- glue (plain JAX): layout + zero pad + im2col + bf16 cast ----------
    x_nhwc = jnp.transpose(x_nchw, (0, 2, 3, 1))
    x_pad = jnp.pad(
        x_nhwc, ((0, 0), (padding, padding), (padding, padding), (0, 0))
    )

    # im2col: gather the KH*KW taps (strided slices done by XLA / the DMA,
    # not inside the kernel) and fold them into the contraction dimension.
    taps = []
    for kh in range(KH):
        for kw in range(KW):
            taps.append(
                lax.slice(
                    x_pad,
                    (0, kh, kw, 0),
                    (N,
                     kh + (OH - 1) * stride + 1,
                     kw + (OW - 1) * stride + 1,
                     Cin),
                    (1, stride, stride, 1),
                )
            )  # each: (N, OH, OW, Cin)
    patches = jnp.concatenate(taps, axis=-1)          # (N, OH, OW, KH*KW*Cin)

    M = N * OH * OW
    K = KH * KW * Cin

    # Weights -> (KH*KW*Cin, Cout), channel order matching the patches (kh, kw, cin).
    w_mat = jnp.transpose(w_oihw, (2, 3, 1, 0)).reshape(K, Cout)

    # Tile sizes: lane-dense K and Cout (multiples of 128); 256-wide Cout tile
    # when it divides evenly (v6e/v7x 2x256 MXU), else 128 (v5e 4x128 MXU).
    TM = 256
    TK = 128
    Cout_p = _round_up(Cout, 128)
    TN = 256 if Cout_p % 256 == 0 else 128
    M_p = _round_up(M, TM)
    K_p = _round_up(K, TK)

    lhs = jnp.pad(patches.reshape(M, K).astype(jnp.bfloat16),
                  ((0, M_p - M), (0, K_p - K)))
    rhs = jnp.pad(w_mat.astype(jnp.bfloat16),
                  ((0, K_p - K), (0, Cout_p - Cout)))

    grid = (M_p // TM, Cout_p // TN, K_p // TK)

    out_bytes = M * Cout * x_nchw.dtype.itemsize
    cost = pl.CostEstimate(
        flops=2 * N * OH * OW * KH * KW * Cin * Cout,
        transcendentals=0,
        bytes_accessed=(x_nchw.size * x_nchw.dtype.itemsize
                        + w_oihw.size * w_oihw.dtype.itemsize
                        + out_bytes),
    )

    out_flat = pl.pallas_call(
        _conv_gemm_kernel,
        out_shape=jax.ShapeDtypeStruct((M_p, Cout_p), x_nchw.dtype),
        grid_spec=pltpu.PrefetchScalarGridSpec(
            num_scalar_prefetch=0,
            grid=grid,
            in_specs=[
                pl.BlockSpec((TM, TK), lambda i, j, k: (i, k)),
                pl.BlockSpec((TK, TN), lambda i, j, k: (k, j)),
            ],
            out_specs=pl.BlockSpec((TM, TN), lambda i, j, k: (i, j)),
            scratch_shapes=[pltpu.VMEM((TM, TN), jnp.float32)],
        ),
        compiler_params=pltpu.CompilerParams(
            dimension_semantics=("parallel", "parallel", "arbitrary"),
            vmem_limit_bytes=32 * 1024 * 1024,  # fits v7x's 64 MiB VMEM too
        ),
        cost_estimate=cost,
    )(lhs, rhs)

    # Drop padding, back to PyTorch's NCHW output convention.
    out_nhwc = out_flat[:M, :Cout].reshape(N, OH, OW, Cout)
    return jnp.transpose(out_nhwc, (0, 3, 1, 2))


if __name__ == "__main__":
    # Small, deterministic config consistent with the module's forward.
    N, Cin, H, W = 2, 4, 16, 16
    Cout, K, stride, padding = 8, 3, 1, 1

    key = jax.random.PRNGKey(0)
    kx, kw = jax.random.split(key)
    x = jax.random.normal(kx, (N, Cin, H, W), dtype=jnp.float32)
    # Deterministic weight init (kaiming-uniform-ish scale, like nn.Conv2d).
    fan_in = Cin * K * K
    bound = 1.0 / (fan_in ** 0.5)
    w = jax.random.uniform(
        kw, (Cout, Cin, K, K), dtype=jnp.float32, minval=-bound, maxval=bound
    )

    out = conv2d_pallas(x, w, stride=stride, padding=padding)
    out = jax.block_until_ready(out)

    # Reference: apply the same bf16 operand rounding the MXU path uses, then
    # XLA's f32 conv (same semantics as nn.Conv2d, no bias).
    x_bf = x.astype(jnp.bfloat16).astype(jnp.float32)
    w_bf = w.astype(jnp.bfloat16).astype(jnp.float32)
    ref = lax.conv_general_dilated(
        x_bf, w_bf,
        window_strides=(stride, stride),
        padding=((padding, padding), (padding, padding)),
        dimension_numbers=("NCHW", "OIHW", "NCHW"),
    )
    assert out.shape == ref.shape, (out.shape, ref.shape)
    assert jnp.allclose(out, ref, atol=1e-3, rtol=1e-3), float(
        jnp.max(jnp.abs(out - ref))
    )

    print("KERNEL_OK")
</pallas_src>

<mosaic_0001>
module attributes {stable_mosaic.version = 11 : i64} {
  func.func @_conv_gemm_kernel(%arg0: i32, %arg1: i32, %arg2: i32, %arg3: memref<256x128xbf16, #tpu.memory_space<vmem>>, %arg4: memref<128x128xbf16, #tpu.memory_space<vmem>>, %arg5: memref<256x128xf32, #tpu.memory_space<vmem>>, %arg6: memref<256x128xf32, #tpu.memory_space<vmem>>) attributes {dimension_semantics = [#tpu.dimension_semantics<parallel>, #tpu.dimension_semantics<parallel>, #tpu.dimension_semantics<arbitrary>], iteration_bounds = array<i64: 2, 1, 1>, scalar_prefetch = 0 : i64, scratch_operands = 1 : i64, tpu.core_type = #tpu.core_type<tc>, window_params = [{transform_indices = @transform_0, window_bounds = array<i64: 256, 128>}, {transform_indices = @transform_1, window_bounds = array<i64: 128, 128>}, {transform_indices = @transform_2, window_bounds = array<i64: 256, 128>}]} {
    %c0_i32 = arith.constant 0 : i32
    %0 = arith.cmpi eq, %arg2, %c0_i32 : i32
    %1 = arith.extui %0 : i1 to i32
    %c0_i32_0 = arith.constant 0 : i32
    %2 = arith.cmpi ne, %1, %c0_i32_0 : i32
    scf.if %2 {
      %cst_10 = arith.constant 0.000000e+00 : f32
      %12 = vector.broadcast %cst_10 : f32 to vector<256x128xf32>
      %c0_11 = arith.constant 0 : index
      %c0_12 = arith.constant 0 : index
      %13 = vector.load %arg6[%c0_11, %c0_12] : memref<256x128xf32, #tpu.memory_space<vmem>>, vector<256x128xf32>
      tpu.vector_store %arg6[%c0_11, %c0_12], %12 {strides = array<i32>} : memref<256x128xf32, #tpu.memory_space<vmem>>, vector<256x128xf32>,
    } else {
    }
    %c0 = arith.constant 0 : index
    %c0_1 = arith.constant 0 : index
    %3 = vector.load %arg6[%c0, %c0_1] : memref<256x128xf32, #tpu.memory_space<vmem>>, vector<256x128xf32>
    %c0_2 = arith.constant 0 : index
    %c0_3 = arith.constant 0 : index
    %4 = vector.load %arg3[%c0_2, %c0_3] : memref<256x128xbf16, #tpu.memory_space<vmem>>, vector<256x128xbf16>
    %c0_4 = arith.constant 0 : index
    %c0_5 = arith.constant 0 : index
    %5 = vector.load %arg4[%c0_4, %c0_5] : memref<128x128xbf16, #tpu.memory_space<vmem>>, vector<128x128xbf16>
    %cst = arith.constant dense<0.000000e+00> : vector<256x128xf32>
    %6 = tpu.matmul %4, %5, %cst {dimension_numbers = #tpu.dot_dimension_numbers<[1], [0], [0], [1], [0, 0, 1, 1], [], []>} : vector<256x128xbf16>, vector<128x128xbf16>, vector<256x128xf32> -> vector<256x128xf32>
    %7 = arith.addf %3, %6 : vector<256x128xf32>
    %c0_6 = arith.constant 0 : index
    %c0_7 = arith.constant 0 : index
    %8 = vector.load %arg6[%c0_6, %c0_7] : memref<256x128xf32, #tpu.memory_space<vmem>>, vector<256x128xf32>
    tpu.vector_store %arg6[%c0_6, %c0_7], %7 {strides = array<i32>} : memref<256x128xf32, #tpu.memory_space<vmem>>, vector<256x128xf32>,
    %c0_i32_8 = arith.constant 0 : i32
    %9 = arith.cmpi eq, %arg2, %c0_i32_8 : i32
    %10 = arith.extui %9 : i1 to i32
    %c0_i32_9 = arith.constant 0 : i32
    %11 = arith.cmpi ne, %10, %c0_i32_9 : i32
    scf.if %11 {
      %c0_10 = arith.constant 0 : index
      %c0_11 = arith.constant 0 : index
      %12 = vector.load %arg6[%c0_10, %c0_11] : memref<256x128xf32, #tpu.memory_space<vmem>>, vector<256x128xf32>
      %c0_12 = arith.constant 0 : index
      %c0_13 = arith.constant 0 : index
      %13 = vector.load %arg5[%c0_12, %c0_13] : memref<256x128xf32, #tpu.memory_space<vmem>>, vector<256x128xf32>
      tpu.vector_store %arg5[%c0_12, %c0_13], %12 {strides = array<i32>} : memref<256x128xf32, #tpu.memory_space<vmem>>, vector<256x128xf32>,
    } else {
    }
    return
  }
  func.func @transform_0(%arg0: i32, %arg1: i32, %arg2: i32) -> (i32, i32) {
    %c0_i32 = arith.constant 0 : i32
    return %arg0, %arg2 : i32, i32
  }
  func.func @transform_1(%arg0: i32, %arg1: i32, %arg2: i32) -> (i32, i32) {
    %c0_i32 = arith.constant 0 : i32
    return %arg2, %arg1 : i32, i32
  }
  func.func @transform_2(%arg0: i32, %arg1: i32, %arg2: i32) -> (i32, i32) {
    %c0_i32 = arith.constant 0 : i32
    return %arg0, %arg1 : i32, i32
  }
}

</mosaic_0001>

<bundles_post_ra>
// kernel: conv2d_pallas.1
= control target key start
LH: loop header
LB: loop body
LE: loop exit
PB: predicated region body
PF: predicated region fallthrough
CT: control target
= control target key end

     0   :  { %s1081_s9 = smov 0   ;;  %s1083_s10 = smov 0   ;;  %s1194_s0 = inlined_call_operand.vmem [shape: bf16[512,128], index: 0, kind: input, shape index: {}]   ;;  %s1195_s1 = inlined_call_operand.vmem [shape: bf16[128,128], index: 1, kind: input, shape index: {}]   ;;  %s1196_s2 = inlined_call_operand.vmem [shape: f32[512,128], index: 2, kind: output, shape index: {}]  }
   0x1   :  { %s1085_s11 = smov 0  }
   0x2 LB: > { %s31_s12 = sadd.s32 1, %s1060_s10  ;;  %p875_p0 = scmp.ge.s32.totalorder %s1064_s11, 1  ;;  %s1064_s11 = sphi %s1085_s11, %s12_s11   ;;  %s1060_s10 = sphi %s1083_s10, %s1198_s10   ;;  %s1056_s9 = sphi %s1081_s9, %s1197_s9  }
   0x3   : > { %p33_p1 = scmp.ge.s32.totalorder %s31_s12, 2  ;;  %p155_p2 = scmp.lt.s32.totalorder %s1064_s11, 3 }
   0x5   : > { %s1200_s12 = smov (%p33_p1, %s31_s12), 0  ;;  %p156_p3 = pnand %p875_p0, %p155_p2 }
   0x6   : > { %v1018_v0 = vld [vmem:[%s1195_s1] sm:$0xff] (!%p156_p3)   ;;  %s876_s15 = sshll.u32 (!%p156_p3), %s1056_s9, 5  ;;  %v1019_v1 = vld [vmem:[%s1195_s1 + $0x8] sm:$0xff] (!%p156_p3)   ;;  %v1020_v2 = vld [vmem:[%s1195_s1 + $0x10] sm:$0xff] (!%p156_p3)  }
   0x7   : > { %159 = sbr.rel (%p156_p3) target bundleno = 279 (0x117), region = 28  ;;  %p192_p4 = scmp.lt.s32.totalorder (!%p156_p3), %s876_s15, 63  ;;  %930 = vmatprep.subr.bf16.mxu0 (!%p156_p3), %v1018_v0  ;;  %978 = vmatprep.subr.bf16.mxu1 (!%p156_p3), %v1018_v0  ;;  %v1021_v3 = vld [vmem:[%s1195_s1 + $0x18] sm:$0xff] (!%p156_p3)   ;;  %v1022_v6 = vld [vmem:[%s1195_s1 + $0x20] sm:$0xff] (!%p156_p3)   ;;  %v1023_v7 = vld [vmem:[%s1195_s1 + $0x28] sm:$0xff] (!%p156_p3)  }
   0x8   : > { %931 = vmatpush3.bf16.msra.mxu0 (!%p156_p3), %v1018_v0  ;;  %986 = vmatpush3.bf16.msra.mxu1 (!%p156_p3), %v1018_v0  ;;  %v1024_v8 = vld [vmem:[%s1195_s1 + $0x30] sm:$0xff] (!%p156_p3)   ;;  %v1025_v9 = vld [vmem:[%s1195_s1 + $0x38] sm:$0xff] (!%p156_p3)  }
   0x9   : > { %932 = vmatprep.subr.bf16.mxu0 (!%p156_p3), %v1019_v1  ;;  %979 = vmatprep.subr.bf16.mxu1 (!%p156_p3), %v1019_v1 }
   0xc   : > { %933 = vmatpush3.bf16.msra.mxu0 (!%p156_p3), %v1019_v1  ;;  %987 = vmatpush3.bf16.msra.mxu1 (!%p156_p3), %v1019_v1 }
   0xd   : > { %934 = vmatprep.subr.bf16.mxu0 (!%p156_p3), %v1020_v2  ;;  %980 = vmatprep.subr.bf16.mxu1 (!%p156_p3), %v1020_v2 }
   0xe   : > { %s1202_s15 = smov (!%p192_p4, %s876_s15), 63 }
   0xf   : > { %s877_s20 = sshll.u32 %s1202_s15, 2  ;;  %s879_s6 = sshll.u32 %s1202_s15, 3 }
  0x10   : > { %s1114_s23 = scalar_lea.vmem %s1194_s0, %s877_s20  ;;  %935 = vmatpush3.bf16.msra.mxu0 %v1020_v2  ;;  %988 = vmatpush3.bf16.msra.mxu1 %v1020_v2  ;;  %s1151_s9 = scalar_lea.vmem %s1196_s2, %s879_s6 }
  0x11   : > { %v1026_v4 = vld [vmem:[%s1114_s23] sm:$0xff]   ;;  %936 = vmatprep.subr.bf16.mxu0 %v1021_v3  ;;  %981 = vmatprep.subr.bf16.mxu1 %v1021_v3  ;;  %v1028_v10 = vld [vmem:[%s1114_s23 + $0x8] sm:$0xff]   ;;  %v1030_v12 = vld [vmem:[%s1114_s23 + $0x10] sm:$0xff]  }
  0x12   : > { %v1027_v5 = vld [vmem:[%s1114_s23 + $0x40] sm:$0xff]   ;;  %946 = vmatprep.mubr.bf16.mxu0 %v1026_v4  ;;  %v1029_v11 = vld [vmem:[%s1114_s23 + $0x48] sm:$0xff]   ;;  %v1031_v13 = vld [vmem:[%s1114_s23 + $0x50] sm:$0xff]  }
  0x13   : > { %962 = vmatprep.mubr.bf16.mxu1 %v1027_v5  ;;  %v1032_v14 = vld [vmem:[%s1114_s23 + $0x18] sm:$0xff]   ;;  %v1034_v16 = vld [vmem:[%s1114_s23 + $0x20] sm:$0xff]   ;;  %v1036_v18 = vld [vmem:[%s1114_s23 + $0x28] sm:$0xff]  }
  0x14   : > { %937 = vmatpush3.bf16.msra.mxu0 %v1021_v3  ;;  %989 = vmatpush3.bf16.msra.mxu1 %v1021_v3  ;;  %v1033_v15 = vld [vmem:[%s1114_s23 + $0x58] sm:$0xff]   ;;  %v1035_v17 = vld [vmem:[%s1114_s23 + $0x60] sm:$0xff]   ;;  %v1037_v19 = vld [vmem:[%s1114_s23 + $0x68] sm:$0xff]  }
  0x15   : > { %938 = vmatprep.subr.bf16.mxu0 %v1022_v6  ;;  %982 = vmatprep.subr.bf16.mxu1 %v1022_v6  ;;  %v1038_v20 = vld [vmem:[%s1114_s23 + $0x30] sm:$0xff]   ;;  %v1040_v22 = vld [vmem:[%s1114_s23 + $0x38] sm:$0xff]  }
  0x16   : > { %v1039_v21 = vld [vmem:[%s1114_s23 + $0x70] sm:$0xff]   ;;  %v1041_v23 = vld [vmem:[%s1114_s23 + $0x78] sm:$0xff]  }
  0x18   : > { %939 = vmatpush3.bf16.msra.mxu0 %v1022_v6  ;;  %990 = vmatpush3.bf16.msra.mxu1 %v1022_v6 }
  0x19   : > { %940 = vmatprep.subr.bf16.mxu0 %v1023_v7  ;;  %983 = vmatprep.subr.bf16.mxu1 %v1023_v7 }
  0x1c   : > { %941 = vmatpush3.bf16.msra.mxu0 %v1023_v7  ;;  %991 = vmatpush3.bf16.msra.mxu1 %v1023_v7 }
  0x1d   : > { %942 = vmatprep.subr.bf16.mxu0 %v1024_v8  ;;  %984 = vmatprep.subr.bf16.mxu1 %v1024_v8 }
  0x20   : > { %943 = vmatpush3.bf16.msra.mxu0 %v1024_v8  ;;  %992 = vmatpush3.bf16.msra.mxu1 %v1024_v8 }
  0x21   : > { %944 = vmatprep.subr.bf16.mxu0 %v1025_v9  ;;  %985 = vmatprep.subr.bf16.mxu1 %v1025_v9 }
  0x24   : > { %945 = vmatpush3.bf16.msra.mxu0 %v1025_v9  ;;  %993 = vmatpush3.bf16.msra.mxu1 %v1025_v9 }
  0x27   : > { %947 = vmatmul.mubr.bf16.vlgmr.msra.gmra.mrb[0].mxu0 %v1028_v10  ;;  %963 = vmatmul.mubr.bf16.vlgmr.msra.gmra.mrb[0].mxu1 %v1029_v11 }
  0x28   : > { %950 = vmatprep.mubr.bf16.mxu0 %v1030_v12  ;;  %966 = vmatprep.mubr.bf16.mxu1 %v1031_v13 }
  0x2f   : > { %951 = vmatmul.mubr.bf16.gmra.mrb[4].mxu0 %v1032_v14  ;;  %967 = vmatmul.mubr.bf16.gmra.mrb[4].mxu1 %v1033_v15 }
  0x30   : > { %954 = vmatprep.mubr.bf16.mxu0 %v1034_v16  ;;  %970 = vmatprep.mubr.bf16.mxu1 %v1035_v17 }
  0x37   : > { %955 = vmatmul.mubr.bf16.gmra.mrb[8].mxu0 %v1036_v18  ;;  %971 = vmatmul.mubr.bf16.gmra.mrb[8].mxu1 %v1037_v19 }
  0x38   : > { %958 = vmatprep.mubr.bf16.mxu0 %v1038_v20  ;;  %974 = vmatprep.mubr.bf16.mxu1 %v1039_v21 }
  0x3f   : > { %959 = vmatmul.mubr.bf16.gmra.mrb[12].mxu0 %v1040_v22  ;;  %975 = vmatmul.mubr.bf16.gmra.mrb[12].mxu1 %v1041_v23 }
  0xfa   : > { %v948_v24 = vpop.f32.mrb[0].mxu0  ;;  %v964_v25 = vpop.f32.mrb[0].mxu1 }
  0xfb   : > { %741 = vst [vmem:[%s1151_s9 + $0x10] sm:$0xff] %v948_v24  ;;  %757 = vst [vmem:[%s1151_s9 + $0x90] sm:$0xff] %v964_v25  ;;  %v513_v26 = vpop.f32.mrb[1].mxu0  ;;  %v577_v27 = vpop.f32.mrb[1].mxu1 }
  0xfc   : > { %739 = vst [vmem:[%s1151_s9] sm:$0xff] %v513_v26  ;;  %755 = vst [vmem:[%s1151_s9 + $0x80] sm:$0xff] %v577_v27  ;;  %v949_v28 = vpop.f32.mrb[2].mxu0  ;;  %v965_v29 = vpop.f32.mrb[2].mxu1 }
  0xfd   : > { %742 = vst [vmem:[%s1151_s9 + $0x18] sm:$0xff] %v949_v28  ;;  %758 = vst [vmem:[%s1151_s9 + $0x98] sm:$0xff] %v965_v29  ;;  %v516_v30 = vpop.f32.mrb[3].mxu0  ;;  %v580_v31 = vpop.f32.mrb[3].mxu1 }
  0xfe   : > { %740 = vst [vmem:[%s1151_s9 + $0x8] sm:$0xff] %v516_v30  ;;  %756 = vst [vmem:[%s1151_s9 + $0x88] sm:$0xff] %v580_v31 }
 0x102   : > { %v952_v32 = vpop.f32.mrb[4].mxu0  ;;  %v968_v33 = vpop.f32.mrb[4].mxu1 }
 0x103   : > { %745 = vst [vmem:[%s1151_s9 + $0x30] sm:$0xff] %v952_v32  ;;  %761 = vst [vmem:[%s1151_s9 + $0xb0] sm:$0xff] %v968_v33  ;;  %v529_v34 = vpop.f32.mrb[5].mxu0  ;;  %v593_v35 = vpop.f32.mrb[5].mxu1 }
 0x104   : > { %743 = vst [vmem:[%s1151_s9 + $0x20] sm:$0xff] %v529_v34  ;;  %759 = vst [vmem:[%s1151_s9 + $0xa0] sm:$0xff] %v593_v35  ;;  %v953_v36 = vpop.f32.mrb[6].mxu0  ;;  %v969_v37 = vpop.f32.mrb[6].mxu1 }
 0x105   : > { %746 = vst [vmem:[%s1151_s9 + $0x38] sm:$0xff] %v953_v36  ;;  %762 = vst [vmem:[%s1151_s9 + $0xb8] sm:$0xff] %v969_v37  ;;  %v532_v38 = vpop.f32.mrb[7].mxu0  ;;  %v596_v39 = vpop.f32.mrb[7].mxu1 }
 0x106   : > { %744 = vst [vmem:[%s1151_s9 + $0x28] sm:$0xff] %v532_v38  ;;  %760 = vst [vmem:[%s1151_s9 + $0xa8] sm:$0xff] %v596_v39 }
 0x10a   : > { %v956_v40 = vpop.f32.mrb[8].mxu0  ;;  %v972_v41 = vpop.f32.mrb[8].mxu1 }
 0x10b   : > { %749 = vst [vmem:[%s1151_s9 + $0x50] sm:$0xff] %v956_v40  ;;  %765 = vst [vmem:[%s1151_s9 + $0xd0] sm:$0xff] %v972_v41  ;;  %v545_v42 = vpop.f32.mrb[9].mxu0  ;;  %v609_v43 = vpop.f32.mrb[9].mxu1 }
 0x10c   : > { %747 = vst [vmem:[%s1151_s9 + $0x40] sm:$0xff] %v545_v42  ;;  %763 = vst [vmem:[%s1151_s9 + $0xc0] sm:$0xff] %v609_v43  ;;  %v957_v44 = vpop.f32.mrb[10].mxu0  ;;  %v973_v45 = vpop.f32.mrb[10].mxu1 }
 0x10d   : > { %750 = vst [vmem:[%s1151_s9 + $0x58] sm:$0xff] %v957_v44  ;;  %766 = vst [vmem:[%s1151_s9 + $0xd8] sm:$0xff] %v973_v45  ;;  %v548_v46 = vpop.f32.mrb[11].mxu0  ;;  %v612_v47 = vpop.f32.mrb[11].mxu1 }
 0x10e   : > { %748 = vst [vmem:[%s1151_s9 + $0x48] sm:$0xff] %v548_v46  ;;  %764 = vst [vmem:[%s1151_s9 + $0xc8] sm:$0xff] %v612_v47 }
 0x112   : > { %v960_v48 = vpop.f32.mrb[12].mxu0  ;;  %v976_v49 = vpop.f32.mrb[12].mxu1 }
 0x113   : > { %753 = vst [vmem:[%s1151_s9 + $0x70] sm:$0xff] %v960_v48  ;;  %769 = vst [vmem:[%s1151_s9 + $0xf0] sm:$0xff] %v976_v49  ;;  %v561_v50 = vpop.f32.mrb[13].mxu0  ;;  %v625_v51 = vpop.f32.mrb[13].mxu1 }
 0x114   : > { %751 = vst [vmem:[%s1151_s9 + $0x60] sm:$0xff] %v561_v50  ;;  %767 = vst [vmem:[%s1151_s9 + $0xe0] sm:$0xff] %v625_v51  ;;  %v961_v52 = vpop.f32.mrb[14].mxu0  ;;  %v977_v53 = vpop.f32.mrb[14].mxu1 }
 0x115   : > { %754 = vst [vmem:[%s1151_s9 + $0x78] sm:$0xff] %v961_v52  ;;  %770 = vst [vmem:[%s1151_s9 + $0xf8] sm:$0xff] %v977_v53  ;;  %v564_v54 = vpop.f32.mrb[15].mxu0  ;;  %v628_v55 = vpop.f32.mrb[15].mxu1 }
 0x116   : > { %752 = vst [vmem:[%s1151_s9 + $0x68] sm:$0xff] %v564_v54  ;;  %768 = vst [vmem:[%s1151_s9 + $0xe8] sm:$0xff] %v628_v55 }
 0x117 PF: > { %s12_s11 = sadd.s32 1, %s1064_s11   ;;  %s1197_s9 = smov %s1060_s10 }
 0x118   : > { %p9_p5 = scmp.ge.s32.totalorder %s12_s11, 4   ;;  %s1198_s10 = smov %s1200_s12 }
 0x11a   :  { %11 = sbr.rel (!%p9_p5) target bundleno = 2 (0x2), region = 69 }

</bundles_post_ra>
